<compile_context>
chip_gen: v6e
topology: v6e:2x2x1
jax: 0.10.0
libtpu: 0.0.40
codegen_flags: <defaults>
</compile_context>

<pallas_src>
import math

import jax
import jax.numpy as jnp
from jax.experimental import pallas as pl
from jax.experimental.pallas import tpu as pltpu


def _pe_add_kernel(x_ref, pe_ref, o_ref):
    # (seq_block, B, d_block) + (seq_block, 1, d_block): broadcast over batch on the VPU
    # (free in this HBM-bound kernel); cast at the store so mixed dtypes stay safe.
    o_ref[...] = (x_ref[...] + pe_ref[...]).astype(o_ref.dtype)


def make_positional_encoding_table(d_model, max_len=5000, dtype=jnp.float32):
    """Deterministic parameter setup (mirrors the PyTorch __init__ buffer)."""
    position = jnp.arange(0, max_len, dtype=jnp.float32)[:, None]              # (max_len, 1)
    div_term = jnp.exp(
        jnp.arange(0, d_model, 2, dtype=jnp.float32) * (-math.log(10000.0) / d_model)
    )                                                                           # (d_model/2,)
    angles = position * div_term                                                # (max_len, d_model/2)
    pe = jnp.zeros((max_len, d_model), dtype=jnp.float32)
    pe = pe.at[:, 0::2].set(jnp.sin(angles))
    pe = pe.at[:, 1::2].set(jnp.cos(angles))
    return pe.astype(dtype)


def _round_up(x, m):
    return ((x + m - 1) // m) * m


def _sublane_pack(dtype):
    # Rows per vreg sublane group: 8 for f32, 16 for bf16, 32 for int8/fp8.
    return max(8, 32 // jnp.dtype(dtype).itemsize)


def _choose_blocks(S, B, D, dtype, target_tile_bytes):
    """Pick (seq_block, d_block) so one x/out tile is ~target_tile_bytes of (padded) VMEM."""
    itemsize = jnp.dtype(dtype).itemsize
    pack = _sublane_pack(dtype)
    padded_b = _round_up(B, pack)            # conservative sublane padding of the batch dim

    # Lane (d_model) blocking: only split D when even a minimal-height tile is too big.
    min_row_tile = pack * padded_b * _round_up(D, 128) * itemsize
    if D > 128 and min_row_tile > target_tile_bytes:
        d_block = max(128, (target_tile_bytes // (pack * padded_b * itemsize)) // 128 * 128)
        d_block = min(d_block, _round_up(D, 128))
    else:
        d_block = D

    # Seq blocking: biggest multiple-of-pack tile within the byte target,
    # capped so the parallel grid has at least 2 steps (v7x has 2 TensorCores).
    row_bytes = padded_b * _round_up(d_block, 128) * itemsize
    seq_block = max(pack, (target_tile_bytes // row_bytes) // pack * pack)
    seq_block = min(seq_block, _round_up(S, pack))
    seq_block = min(seq_block, max(pack, _round_up(pl.cdiv(S, 2), pack)))
    return int(seq_block), int(d_block)


def positional_encoding_forward(
    x,
    pe,
    *,
    target_tile_bytes=4 * 1024 * 1024,
    vmem_limit_bytes=48 * 1024 * 1024,
):
    """x: (S, B, D); pe: (max_len, D) with max_len >= S. Returns x + pe[:S][:, None, :]."""
    S, B, D = x.shape
    max_len = pe.shape[0]
    assert max_len >= S and pe.shape[-1] == D
    itemsize = jnp.dtype(x.dtype).itemsize

    seq_block, d_block = _choose_blocks(S, B, D, x.dtype, target_tile_bytes)
    grid = (pl.cdiv(S, seq_block), pl.cdiv(D, d_block))

    # Free metadata reshape: keep D on lanes, unit batch dim broadcast in-kernel.
    pe3 = pe.reshape(max_len, 1, D)

    return pl.pallas_call(
        _pe_add_kernel,
        out_shape=jax.ShapeDtypeStruct((S, B, D), x.dtype),
        grid_spec=pltpu.PrefetchScalarGridSpec(
            num_scalar_prefetch=0,
            grid=grid,
            in_specs=[
                pl.BlockSpec((seq_block, B, d_block), lambda i, j: (i, 0, j)),   # x tile
                pl.BlockSpec((seq_block, 1, d_block), lambda i, j: (i, 0, j)),   # pe tile (in-bounds: max_len >= S)
            ],
            out_specs=pl.BlockSpec((seq_block, B, d_block), lambda i, j: (i, 0, j)),
        ),
        compiler_params=pltpu.CompilerParams(
            dimension_semantics=("parallel", "parallel"),
            vmem_limit_bytes=vmem_limit_bytes,
        ),
        cost_estimate=pl.CostEstimate(
            flops=S * B * D,
            transcendentals=0,
            bytes_accessed=(2 * S * B * D + S * D) * itemsize,
        ),
    )(x, pe3)


if __name__ == "__main__":
    # Small shapes consistent with the module: seq=8, batch=2, d_model=32.
    S, B, D = 8, 2, 32
    MAX_LEN = 5000  # module default

    key = jax.random.PRNGKey(0)
    x = jax.random.normal(key, (S, B, D), dtype=jnp.float32)
    pe = make_positional_encoding_table(D, max_len=MAX_LEN)

    out = jax.block_until_ready(positional_encoding_forward(x, pe))
    ref = x + pe[:S][:, None, :]
    assert out.shape == (S, B, D)
    assert jnp.allclose(out, ref, atol=1e-6, rtol=1e-6)

    # Exercise the ragged last seq tile (S not a multiple of the seq block) — no wrapper padding.
    S2 = 20
    x2 = jax.random.normal(jax.random.PRNGKey(0), (S2, B, D), dtype=jnp.float32)
    out2 = jax.block_until_ready(positional_encoding_forward(x2, pe))
    ref2 = x2 + pe[:S2][:, None, :]
    assert out2.shape == (S2, B, D)
    assert jnp.allclose(out2, ref2, atol=1e-6, rtol=1e-6)

    print("KERNEL_OK")
</pallas_src>

<mosaic_0001>
module attributes {stable_mosaic.version = 11 : i64} {
  func.func @_pe_add_kernel(%arg0: i32, %arg1: i32, %arg2: memref<8x2x32xf32, #tpu.memory_space<vmem>>, %arg3: memref<8x1x32xf32, #tpu.memory_space<vmem>>, %arg4: memref<8x2x32xf32, #tpu.memory_space<vmem>>) attributes {dimension_semantics = [#tpu.dimension_semantics<parallel>, #tpu.dimension_semantics<parallel>], iteration_bounds = array<i64: 1, 1>, scalar_prefetch = 0 : i64, scratch_operands = 0 : i64, tpu.core_type = #tpu.core_type<tc>, window_params = [{transform_indices = @transform_0, window_bounds = array<i64: 8, 2, 32>}, {transform_indices = @transform_1, window_bounds = array<i64: 8, 1, 32>}, {transform_indices = @transform_2, window_bounds = array<i64: 8, 2, 32>}]} {
    %c0 = arith.constant 0 : index
    %c0_0 = arith.constant 0 : index
    %c0_1 = arith.constant 0 : index
    %0 = vector.load %arg2[%c0, %c0_0, %c0_1] : memref<8x2x32xf32, #tpu.memory_space<vmem>>, vector<8x2x32xf32>
    %c0_2 = arith.constant 0 : index
    %c0_3 = arith.constant 0 : index
    %c0_4 = arith.constant 0 : index
    %1 = vector.load %arg3[%c0_2, %c0_3, %c0_4] : memref<8x1x32xf32, #tpu.memory_space<vmem>>, vector<8x1x32xf32>
    %2 = vector.broadcast %1 : vector<8x1x32xf32> to vector<8x2x32xf32>
    %3 = arith.addf %0, %2 : vector<8x2x32xf32>
    %c0_5 = arith.constant 0 : index
    %c0_6 = arith.constant 0 : index
    %c0_7 = arith.constant 0 : index
    %4 = vector.load %arg4[%c0_5, %c0_6, %c0_7] : memref<8x2x32xf32, #tpu.memory_space<vmem>>, vector<8x2x32xf32>
    tpu.vector_store %arg4[%c0_5, %c0_6, %c0_7], %3 {strides = array<i32>} : memref<8x2x32xf32, #tpu.memory_space<vmem>>, vector<8x2x32xf32>,
    return
  }
  func.func @transform_0(%arg0: i32, %arg1: i32) -> (i32, i32, i32) {
    %c0_i32 = arith.constant 0 : i32
    %c0_i32_0 = arith.constant 0 : i32
    return %arg0, %c0_i32, %arg1 : i32, i32, i32
  }
  func.func @transform_1(%arg0: i32, %arg1: i32) -> (i32, i32, i32) {
    %c0_i32 = arith.constant 0 : i32
    %c0_i32_0 = arith.constant 0 : i32
    return %arg0, %c0_i32, %arg1 : i32, i32, i32
  }
  func.func @transform_2(%arg0: i32, %arg1: i32) -> (i32, i32, i32) {
    %c0_i32 = arith.constant 0 : i32
    %c0_i32_0 = arith.constant 0 : i32
    return %arg0, %c0_i32, %arg1 : i32, i32, i32
  }
}

</mosaic_0001>

<bundles_post_ra>
// kernel: tpu_custom_call.1
= control target key start
LH: loop header
LB: loop body
LE: loop exit
PB: predicated region body
PF: predicated region fallthrough
CT: control target
= control target key end

     0   :  { %vm84_vm0 = vcmask 254976   ;;  %s219_s0 = inlined_call_operand.vmem [shape: f32[8,2,32], index: 0, kind: input, shape index: {}]   ;;  %s220_s1 = inlined_call_operand.vmem [shape: f32[5000,1,32], index: 1, kind: input, shape index: {}]   ;;  %s221_s2 = inlined_call_operand.hbm [shape: f32[8,2,32], index: 2, kind: output, shape index: {}]  }
   0x1   :  { %v12_v0 = vld [vmem:[%s219_s0] sm:$0x3]  ;;  %v13_v3 = vld [vmem:[%s219_s0 + $0x2] sm:$0x3]  ;;  %v14_v5 = vld [vmem:[%s219_s0 + $0x4] sm:$0x3] }
   0x2   :  { %v109_v1 = vld [vmem:[%s220_s1] ss:$0 sm:$0xff]  ;;  %v110_v4 = vld [vmem:[%s220_s1 + $0x1] ss:$0 sm:$0xff]  ;;  %v111_v7 = vld [vmem:[%s220_s1 + $0x2] ss:$0 sm:$0xff] }
   0x3   :  { %v76_v2 = vadd.f32 %v109_v1, %v12_v0  ;;  %v77_v6 = vadd.f32 %v110_v4, %v13_v3  ;;  %v15_v8 = vld [vmem:[%s219_s0 + $0x6] sm:$0x3]  ;;  %v112_v9 = vld [vmem:[%s220_s1 + $0x3] ss:$0 sm:$0xff]  ;;  %v78_v10 = vadd.f32 %v111_v7, %v14_v5  ;;  %v16_v12 = vld [vmem:[%s219_s0 + $0x8] sm:$0x3] }
   0x4   :  { %v79_v11 = vadd.f32 %v112_v9, %v15_v8  ;;  %v113_v13 = vld [vmem:[%s220_s1 + $0x4] ss:$0 sm:$0xff]  ;;  %v17_v14 = vld [vmem:[%s219_s0 + $0xa] sm:$0x3]  ;;  %v114_v16 = vld [vmem:[%s220_s1 + $0x5] ss:$0 sm:$0xff] }
   0x5   :  { %85 = vst.msk [vmem:[#allocation2] sm:$0x3] %vm84_vm0, %v76_v2  ;;  %86 = vst.msk [vmem:[#allocation2 + $0x2] sm:$0x3] %vm84_vm0, %v77_v6  ;;  %v80_v15 = vadd.f32 %v113_v13, %v16_v12  ;;  %v18_v17 = vld [vmem:[%s219_s0 + $0xc] sm:$0x3]  ;;  %v81_v19 = vadd.f32 %v114_v16, %v17_v14 }
   0x6   :  { %v115_v18 = vld [vmem:[%s220_s1 + $0x6] ss:$0 sm:$0xff]  ;;  %87 = vst.msk [vmem:[#allocation2 + $0x4] sm:$0x3] %vm84_vm0, %v78_v10  ;;  %88 = vst.msk [vmem:[#allocation2 + $0x6] sm:$0x3] %vm84_vm0, %v79_v11 }
   0x7   :  { %v82_v20 = vadd.f32 %v115_v18, %v18_v17  ;;  %v19_v21 = vld [vmem:[%s219_s0 + $0xe] sm:$0x3]  ;;  %v116_v22 = vld [vmem:[%s220_s1 + $0x7] ss:$0 sm:$0xff] }
   0x8   :  { %7 = vsyncpa [#allocation3], 0  ;;  %89 = vst.msk [vmem:[#allocation2 + $0x8] sm:$0x3] %vm84_vm0, %v80_v15  ;;  %v83_v23 = vadd.f32 %v116_v22, %v19_v21  ;;  %s142_s13 = smov [#allocation2]  }
   0x9   :  { %s98_s14 = sshll.u32 %s142_s13, 4  ;;  %90 = vst.msk [vmem:[#allocation2 + $0xa] sm:$0x3] %vm84_vm0, %v81_v19  ;;  %91 = vst.msk [vmem:[#allocation2 + $0xc] sm:$0x3] %vm84_vm0, %v82_v20  ;;  %s99_s14 = int_to_ptr.vmem [resolvable:$true] %s98_s14 }
   0xa   :  { %92 = vst.msk [vmem:[#allocation2 + $0xe] sm:$0x3] %vm84_vm0, %v83_v23  ;;  %s120_s15 = scalar_lea.vmem %s99_s14, 256  ;;  %p125_p1 = scmp.lt.s32.totalorder %s99_s14, %s99_s14 }
   0xb   :  { %p121_p0 = scmp.ne.s32.totalorder %s99_s14, %s120_s15  ;;  %p126_p2 = scmp.lt.s32.totalorder %s120_s15, %s120_s15 }
   0xd   :  { %p127_p3 = por %p126_p2, %p125_p1 }
   0xf   :  { %p128_p4 = pnand %p127_p3, %p121_p0 }
  0x11   :  { %131 = shalt.err (!%p128_p4)
}
  0x12   :  { %s143_s0 = smov 32   ;;  %s144_s1 = smov 2  }
  0x13   :  { %104 = dma.vmem_to_hbm [thread:$0]  %s99_s14, 256, %s221_s2, [#allocation3], %s143_s0, %s143_s0, %s144_s1  }
  0x14   :  { %140 = dma.done.wait [#allocation3], 256  }
  0x15   :  { %141 = vsyncadd [#allocation3], 4294967040 }
  0x16   :  { %108 = vsyncpa [#allocation3], 1 }

</bundles_post_ra>
